<compile_context>
chip_gen: v6e
topology: v6e:2x2x1
jax: 0.10.0
libtpu: 0.0.40
codegen_flags: <defaults>
</compile_context>

<pallas_src>
import jax
import jax.numpy as jnp
import numpy as np
from jax.experimental import pallas as pl
from jax.experimental.pallas import tpu as pltpu

BN_EPS = 1e-5
LANE = 128      # lane width (last dim)
SUBLANE = 8     # f32 sublane multiple (second-to-last dim)


def _round_up(x, m):
    return (x + m - 1) // m * m


def _tpu_generation_caps():
    """Return (per-core VMEM budget in bytes, max batch tile) for the local TPU generation."""
    kind = ""
    try:
        kind = jax.devices()[0].device_kind.lower()
    except Exception:
        pass
    if "v7" in kind or "7x" in kind:
        return 52 << 20, 256          # v7x: 64 MiB per TensorCore, 256-wide MXU
    if "v6" in kind:
        return 100 << 20, 256         # v6e: 128 MiB VMEM, 256-wide MXU
    if "v5 lite" in kind or "v5e" in kind:
        return 100 << 20, 128         # v5e: 128 MiB VMEM, 128-wide MXU
    return 64 << 20, 128              # unknown / older generations: conservative


def _pick_batch_tile(B, max_tb):
    """Pick (TB, Bp) minimizing padded rows (wasted MXU + epilogue work) with a small
    per-grid-step penalty and a preference for >= 2 grid steps (v7x megacore)."""
    best = None
    for tb in (8, 16, 32, 64, 128, 256):
        if tb > max_tb:
            continue
        bp = _round_up(max(B, SUBLANE), tb)
        steps = bp // tb
        score = (bp - B) + 2 * steps + (4 if steps < 2 else 0)
        key = (score, 0 if steps >= 2 else 1, -tb)
        if best is None or key < best[0]:
            best = (key, tb, bp)
    return best[1], best[2]


# ---------------------------------------------------------------------------
# Fused Pallas kernel (all layers + final linear, all experts per layer in one matmul)
# ---------------------------------------------------------------------------
def _make_fused_kernel(nlayers, K, Hp, weighted):
    inv_k = np.float32(1.0 / K)

    def kernel(*refs):
        i = 0
        x_ref = refs[i]; i += 1                 # [TB, D0p] bf16 (batch-tiled)
        if weighted:
            aw_ref = refs[i]; i += 1            # [nlayers, TB, K] f32 (batch-tiled)
        w_refs = refs[i:i + nlayers]; i += nlayers   # each [Dp, K*Hp] bf16, VMEM-resident
        ss_ref, wout_ref, bout_ref, o_ref = refs[i:i + 4]

        h = x_ref[...]                          # bf16 for layer-0 matmul
        for l in range(nlayers):
            # All K experts in one lane-dense bf16 MXU matmul, f32 accumulation.
            y = jnp.dot(h.astype(jnp.bfloat16), w_refs[l][...],
                        preferred_element_type=jnp.float32)         # [TB, K*Hp] f32
            # Fused Linear-bias + BatchNorm1d(eval) affine, then ReLU (f32 epilogue).
            sc = ss_ref[2 * l:2 * l + 1, :]                          # [1, K*Hp]
            sh = ss_ref[2 * l + 1:2 * l + 2, :]                      # [1, K*Hp]
            y = jnp.maximum(y * sc + sh, 0.0)
            if weighted:
                # Weighted combine: per-expert broadcast of the tiny [TB, K] arch weights.
                aw_l = aw_ref[l]                                     # [TB, K]
                h = aw_l[:, 0:1] * y[:, 0:Hp]
                for k in range(1, K):
                    h = h + aw_l[:, k:k + 1] * y[:, k * Hp:(k + 1) * Hp]
            else:
                # Mean over K experts: straight lane-aligned adds + one scale (exact,
                # since ReLU(a*z) = a*ReLU(z) for a > 0); no aw operand, no broadcasts.
                h = y[:, 0:Hp]
                for k in range(1, K):
                    h = h + y[:, k * Hp:(k + 1) * Hp]
                h = h * inv_k
        # Final nn.Linear(nhid, noutput); output lane-padded to 128 -> unmasked vst.
        out = jnp.dot(h.astype(jnp.bfloat16), wout_ref[...],
                      preferred_element_type=jnp.float32) + bout_ref[...]
        o_ref[...] = out.astype(o_ref.dtype)

    return kernel


# ---------------------------------------------------------------------------
# Wrapper
# ---------------------------------------------------------------------------
def moemlp_forward(x, kparams, arch_weights=None):
    """Full fused MOEMLP forward.

    x: [B, ninput]; arch_weights: None or [B, nlayers, K].  Returns [B, noutput] f32.
    """
    layers = kparams["layers"]
    K, Hp, nout = kparams["K"], kparams["Hp"], kparams["noutput"]
    nlayers = len(layers)
    weighted = arch_weights is not None

    B, Din = x.shape
    D0p = layers[0]["w"].shape[0]
    KHp = K * Hp
    NOUTp = kparams["out_w"].shape[1]

    vmem_budget, max_tb = _tpu_generation_caps()
    TB, Bp = _pick_batch_tile(B, max_tb)

    # Zero-pad + cast activations once (bf16 halves the x DMA; matmul accum stays f32).
    x_p = jnp.zeros((Bp, D0p), jnp.bfloat16).at[:B, :Din].set(x.astype(jnp.bfloat16))

    # Never-changing operands: whole-array VMEM residents (single-buffered, no pipelining).
    resident_spec = pl.BlockSpec(memory_space=pltpu.MemorySpace.VMEM)

    in_specs = [pl.BlockSpec((TB, D0p), lambda b: (b, 0))]              # x (batch-tiled)
    operands = [x_p]
    if weighted:
        assert arch_weights.shape == (B, nlayers, K)
        aw = jnp.zeros((nlayers, Bp, K), jnp.float32).at[:, :B, :].set(
            jnp.transpose(arch_weights, (1, 0, 2)).astype(jnp.float32))
        in_specs.append(pl.BlockSpec((nlayers, TB, K), lambda b: (0, b, 0)))
        operands.append(aw)
    for lp in layers:
        in_specs.append(resident_spec)                                  # [Dp, K*Hp] bf16
        operands.append(lp["w"])
    in_specs += [resident_spec, resident_spec, resident_spec]
    operands += [kparams["ss"], kparams["out_w"], kparams["out_b"]]

    # VMEM accounting: resident weights (x1) + double-buffered pipelined tiles + temporaries.
    const_start = 2 if weighted else 1
    resident = sum(int(np.prod(o.shape)) * o.dtype.itemsize for o in operands[const_start:])
    pipelined = 2 * (TB * D0p * 2 + TB * NOUTp * 4)                      # x tile + out tile
    if weighted:
        pipelined += 2 * nlayers * TB * max(K, LANE) * 4                 # aw tile (lane-padded)
    temps = TB * (KHp * 4 + 3 * Hp * 4 + D0p * 2)                        # y, h, casts
    needed = resident + pipelined + temps
    if needed > vmem_budget:
        # TODO(synk): for models whose resident bf16 weights exceed the per-core VMEM budget
        # (esp. v7x: 64 MiB/TC, and each core under megacore holds its own copy), switch the
        # per-layer weights to memory_space=pl.ANY and manually double-buffer them with
        # pltpu.make_async_copy (prefetch layer l+1 while computing layer l) with TB as large
        # as possible, instead of keeping every layer resident.
        raise ValueError(
            f"MOEMLP VMEM footprint {needed / 2**20:.1f} MiB (resident {resident / 2**20:.1f} MiB) "
            f"exceeds the {vmem_budget / 2**20:.1f} MiB budget for this TPU generation.")
    vmem_limit = int(min(vmem_budget, max(needed + (16 << 20), 32 << 20)))

    out = pl.pallas_call(
        _make_fused_kernel(nlayers, K, Hp, weighted),
        out_shape=jax.ShapeDtypeStruct((Bp, NOUTp), jnp.float32),
        grid_spec=pltpu.PrefetchScalarGridSpec(
            num_scalar_prefetch=0,
            grid=(Bp // TB,),
            in_specs=in_specs,
            out_specs=pl.BlockSpec((TB, NOUTp), lambda b: (b, 0)),
        ),
        compiler_params=pltpu.CompilerParams(
            dimension_semantics=("parallel",),
            vmem_limit_bytes=vmem_limit),
    )(*operands)
    return out[:B, :nout]


# ---------------------------------------------------------------------------
# Deterministic parameter construction + packing into the kernel layout
# ---------------------------------------------------------------------------
def init_params(key, ninput, nlayers, nhid, K, noutput=1):
    """Raw (unfused, unpadded) synthetic parameters mirroring the PyTorch module (eval mode)."""
    raw = {"layers": [], "noutput": noutput}
    din = ninput
    for _ in range(nlayers):
        key, kw, kb, kg, kbeta, km, kv = jax.random.split(key, 7)
        raw["layers"].append({
            "w": jax.random.normal(kw, (K, din, nhid), jnp.float32) * 0.1,   # Linear weight^T
            "b": jax.random.normal(kb, (K, nhid), jnp.float32) * 0.1,        # Linear bias
            "gamma": 1.0 + 0.1 * jax.random.normal(kg, (K, nhid), jnp.float32),
            "beta": 0.1 * jax.random.normal(kbeta, (K, nhid), jnp.float32),
            "mean": 0.1 * jax.random.normal(km, (K, nhid), jnp.float32),
            "var": 1.0 + 0.5 * jax.random.uniform(kv, (K, nhid), jnp.float32),
        })
        din = nhid
    key, kw, kb = jax.random.split(key, 3)
    raw["out_w"] = jax.random.normal(kw, (nhid, noutput), jnp.float32) * 0.1
    raw["out_b"] = jax.random.normal(kb, (1, noutput), jnp.float32) * 0.1
    return raw


def pack_kernel_params(raw):
    """One-time conversion to the lane-dense kernel layout:
       - BN(eval) + Linear bias fused into per-expert (scale, shift), all layers stacked
         into one [2*nlayers, K*Hp] f32 operand
       - feature dims zero-padded to multiples of 128 lanes
       - K experts concatenated along the lane axis; matmul weights stored in bfloat16."""
    K, _, H = raw["layers"][0]["w"].shape
    Hp = _round_up(H, LANE)
    layers, ss_rows = [], []
    for rp in raw["layers"]:
        K_, din, H_ = rp["w"].shape
        Dp = _round_up(din, LANE)
        scale = rp["gamma"] / jnp.sqrt(rp["var"] + BN_EPS)                 # [K, H]
        shift = (rp["b"] - rp["mean"]) * scale + rp["beta"]                # [K, H]
        w_p = jnp.zeros((K_, Dp, Hp), jnp.float32).at[:, :din, :H_].set(rp["w"])
        sc_p = jnp.zeros((K_, Hp), jnp.float32).at[:, :H_].set(scale)
        sh_p = jnp.zeros((K_, Hp), jnp.float32).at[:, :H_].set(shift)
        w_cat = jnp.concatenate([w_p[k] for k in range(K_)], axis=1)       # [Dp, K*Hp]
        layers.append({"w": w_cat.astype(jnp.bfloat16)})
        ss_rows.append(jnp.concatenate([sc_p[k] for k in range(K_)], axis=0)[None, :])
        ss_rows.append(jnp.concatenate([sh_p[k] for k in range(K_)], axis=0)[None, :])
    ss = jnp.concatenate(ss_rows, axis=0)                                  # [2*nlayers, K*Hp] f32
    nout = raw["out_w"].shape[1]
    NOUTp = _round_up(nout, LANE)
    out_w = jnp.zeros((Hp, NOUTp), jnp.float32).at[:raw["out_w"].shape[0], :nout].set(raw["out_w"])
    out_b = jnp.zeros((1, NOUTp), jnp.float32).at[:, :nout].set(raw["out_b"])
    return {"layers": layers, "ss": ss, "out_w": out_w.astype(jnp.bfloat16), "out_b": out_b,
            "K": K, "Hp": Hp, "noutput": nout}


# Pure-JAX references (mirror the PyTorch forward, eval mode).
# mirror_bf16=True applies the same bf16 rounding of matmul inputs the kernel uses
# (f32 accumulation and f32 affine/combine everywhere), enabling a tight check.
def reference_forward(x, raw, arch_weights=None, mirror_bf16=False):
    def cast(a):
        return a.astype(jnp.bfloat16) if mirror_bf16 else a
    h = x
    for li, rp in enumerate(raw["layers"]):
        K = rp["w"].shape[0]
        scale = rp["gamma"] / jnp.sqrt(rp["var"] + BN_EPS)     # eval-mode BN as an affine
        shift = (rp["b"] - rp["mean"]) * scale + rp["beta"]
        outs = []
        for k in range(K):
            y = jnp.dot(cast(h), cast(rp["w"][k]), preferred_element_type=jnp.float32)
            outs.append(jnp.maximum(y * scale[k] + shift[k], 0.0))
        stacked = jnp.stack(outs, axis=1)                      # [B, K, H]
        if arch_weights is None:
            h = jnp.mean(stacked, axis=1)
        else:
            h = jnp.einsum("bk,bkh->bh", arch_weights[:, li, :], stacked)
    return jnp.dot(cast(h), cast(raw["out_w"]), preferred_element_type=jnp.float32) + raw["out_b"]


# ---------------------------------------------------------------------------
if __name__ == "__main__":
    B, NINPUT, NLAYERS, NHID, K, NOUTPUT = 8, 32, 2, 32, 3, 1

    key = jax.random.PRNGKey(0)
    key, kx, kaw = jax.random.split(key, 3)
    x = jax.random.normal(kx, (B, NINPUT), jnp.float32)
    raw = init_params(key, NINPUT, NLAYERS, NHID, K, NOUTPUT)
    kparams = pack_kernel_params(raw)

    # Default path: arch_weights=None -> mean over K experts (specialized kernel).
    out = jax.block_until_ready(moemlp_forward(x, kparams, arch_weights=None))

    # Weighted path: arch_weights [B, nlayers, K].
    arch_w = jax.nn.softmax(jax.random.normal(kaw, (B, NLAYERS, K), jnp.float32), axis=-1)
    out_w = jax.block_until_ready(moemlp_forward(x, kparams, arch_weights=arch_w))

    # Tight check vs a reference that mirrors the kernel's bf16 matmul-input rounding.
    ref_m = reference_forward(x, raw, arch_weights=None, mirror_bf16=True)
    ref_wm = reference_forward(x, raw, arch_weights=arch_w, mirror_bf16=True)
    np.testing.assert_allclose(np.asarray(out), np.asarray(ref_m), rtol=5e-4, atol=5e-4)
    np.testing.assert_allclose(np.asarray(out_w), np.asarray(ref_wm), rtol=5e-4, atol=5e-4)

    # Sanity check vs the pure f32 module semantics (tolerance covers bf16 weight rounding).
    ref = reference_forward(x, raw, arch_weights=None)
    ref_w = reference_forward(x, raw, arch_weights=arch_w)
    np.testing.assert_allclose(np.asarray(out), np.asarray(ref), rtol=3e-2, atol=3e-2)
    np.testing.assert_allclose(np.asarray(out_w), np.asarray(ref_w), rtol=3e-2, atol=3e-2)

    print("KERNEL_OK")
</pallas_src>

<mosaic_0001>
module attributes {stable_mosaic.version = 11 : i64} {
  func.func @kernel(%arg0: i32, %arg1: memref<8x128xbf16, #tpu.memory_space<vmem>>, %arg2: memref<128x384xbf16, #tpu.memory_space<vmem>>, %arg3: memref<128x384xbf16, #tpu.memory_space<vmem>>, %arg4: memref<4x384xf32, #tpu.memory_space<vmem>>, %arg5: memref<128x128xbf16, #tpu.memory_space<vmem>>, %arg6: memref<1x128xf32, #tpu.memory_space<vmem>>, %arg7: memref<8x128xf32, #tpu.memory_space<vmem>>) attributes {dimension_semantics = [#tpu.dimension_semantics<parallel>], iteration_bounds = array<i64: 1>, scalar_prefetch = 0 : i64, scratch_operands = 0 : i64, tpu.core_type = #tpu.core_type<tc>, window_params = [{transform_indices = @transform_0, window_bounds = array<i64: 8, 128>}, {pipeline_mode = #tpu.pipeline_mode<synchronous>, transform_indices = @transform_1, window_bounds = array<i64: 128, 384>}, {pipeline_mode = #tpu.pipeline_mode<synchronous>, transform_indices = @transform_2, window_bounds = array<i64: 128, 384>}, {pipeline_mode = #tpu.pipeline_mode<synchronous>, transform_indices = @transform_3, window_bounds = array<i64: 4, 384>}, {pipeline_mode = #tpu.pipeline_mode<synchronous>, transform_indices = @transform_4, window_bounds = array<i64: 128, 128>}, {pipeline_mode = #tpu.pipeline_mode<synchronous>, transform_indices = @transform_5, window_bounds = array<i64: 1, 128>}, {transform_indices = @transform_6, window_bounds = array<i64: 8, 128>}]} {
    %c0 = arith.constant 0 : index
    %c0_0 = arith.constant 0 : index
    %0 = vector.load %arg1[%c0, %c0_0] : memref<8x128xbf16, #tpu.memory_space<vmem>>, vector<8x128xbf16>
    %c0_1 = arith.constant 0 : index
    %c0_2 = arith.constant 0 : index
    %1 = vector.load %arg2[%c0_1, %c0_2] : memref<128x384xbf16, #tpu.memory_space<vmem>>, vector<128x384xbf16>
    %cst = arith.constant dense<0.000000e+00> : vector<8x384xf32>
    %2 = tpu.matmul %0, %1, %cst {dimension_numbers = #tpu.dot_dimension_numbers<[1], [0], [0], [1], [0, 0, 1, 1], [], []>} : vector<8x128xbf16>, vector<128x384xbf16>, vector<8x384xf32> -> vector<8x384xf32>
    %c0_3 = arith.constant 0 : index
    %c0_4 = arith.constant 0 : index
    %3 = vector.load %arg4[%c0_3, %c0_4] : memref<4x384xf32, #tpu.memory_space<vmem>>, vector<1x384xf32>
    %c1 = arith.constant 1 : index
    %c0_5 = arith.constant 0 : index
    %4 = vector.load %arg4[%c1, %c0_5] : memref<4x384xf32, #tpu.memory_space<vmem>>, vector<1x384xf32>
    %5 = vector.broadcast %3 : vector<1x384xf32> to vector<8x384xf32>
    %6 = arith.mulf %2, %5 : vector<8x384xf32>
    %7 = vector.broadcast %4 : vector<1x384xf32> to vector<8x384xf32>
    %8 = arith.addf %6, %7 : vector<8x384xf32>
    %cst_6 = arith.constant 0.000000e+00 : f32
    %9 = vector.broadcast %cst_6 : f32 to vector<8x384xf32>
    %10 = arith.maximumf %8, %9 : vector<8x384xf32>
    %11 = vector.extract_strided_slice %10 {offsets = [0, 0], sizes = [8, 128], strides = [1, 1]} : vector<8x384xf32> to vector<8x128xf32>
    %12 = vector.extract_strided_slice %10 {offsets = [0, 128], sizes = [8, 128], strides = [1, 1]} : vector<8x384xf32> to vector<8x128xf32>
    %13 = arith.addf %11, %12 : vector<8x128xf32>
    %14 = vector.extract_strided_slice %10 {offsets = [0, 256], sizes = [8, 128], strides = [1, 1]} : vector<8x384xf32> to vector<8x128xf32>
    %15 = arith.addf %13, %14 : vector<8x128xf32>
    %cst_7 = arith.constant 0.333333343 : f32
    %16 = vector.broadcast %cst_7 : f32 to vector<8x128xf32>
    %17 = arith.mulf %15, %16 : vector<8x128xf32>
    %18 = arith.truncf %17 : vector<8x128xf32> to vector<8x128xbf16>
    %c0_8 = arith.constant 0 : index
    %c0_9 = arith.constant 0 : index
    %19 = vector.load %arg3[%c0_8, %c0_9] : memref<128x384xbf16, #tpu.memory_space<vmem>>, vector<128x384xbf16>
    %cst_10 = arith.constant dense<0.000000e+00> : vector<8x384xf32>
    %20 = tpu.matmul %18, %19, %cst_10 {dimension_numbers = #tpu.dot_dimension_numbers<[1], [0], [0], [1], [0, 0, 1, 1], [], []>} : vector<8x128xbf16>, vector<128x384xbf16>, vector<8x384xf32> -> vector<8x384xf32>
    %c2 = arith.constant 2 : index
    %c0_11 = arith.constant 0 : index
    %21 = vector.load %arg4[%c2, %c0_11] : memref<4x384xf32, #tpu.memory_space<vmem>>, vector<1x384xf32>
    %c3 = arith.constant 3 : index
    %c0_12 = arith.constant 0 : index
    %22 = vector.load %arg4[%c3, %c0_12] : memref<4x384xf32, #tpu.memory_space<vmem>>, vector<1x384xf32>
    %23 = vector.broadcast %21 : vector<1x384xf32> to vector<8x384xf32>
    %24 = arith.mulf %20, %23 : vector<8x384xf32>
    %25 = vector.broadcast %22 : vector<1x384xf32> to vector<8x384xf32>
    %26 = arith.addf %24, %25 : vector<8x384xf32>
    %cst_13 = arith.constant 0.000000e+00 : f32
    %27 = vector.broadcast %cst_13 : f32 to vector<8x384xf32>
    %28 = arith.maximumf %26, %27 : vector<8x384xf32>
    %29 = vector.extract_strided_slice %28 {offsets = [0, 0], sizes = [8, 128], strides = [1, 1]} : vector<8x384xf32> to vector<8x128xf32>
    %30 = vector.extract_strided_slice %28 {offsets = [0, 128], sizes = [8, 128], strides = [1, 1]} : vector<8x384xf32> to vector<8x128xf32>
    %31 = arith.addf %29, %30 : vector<8x128xf32>
    %32 = vector.extract_strided_slice %28 {offsets = [0, 256], sizes = [8, 128], strides = [1, 1]} : vector<8x384xf32> to vector<8x128xf32>
    %33 = arith.addf %31, %32 : vector<8x128xf32>
    %cst_14 = arith.constant 0.333333343 : f32
    %34 = vector.broadcast %cst_14 : f32 to vector<8x128xf32>
    %35 = arith.mulf %33, %34 : vector<8x128xf32>
    %36 = arith.truncf %35 : vector<8x128xf32> to vector<8x128xbf16>
    %c0_15 = arith.constant 0 : index
    %c0_16 = arith.constant 0 : index
    %37 = vector.load %arg5[%c0_15, %c0_16] : memref<128x128xbf16, #tpu.memory_space<vmem>>, vector<128x128xbf16>
    %cst_17 = arith.constant dense<0.000000e+00> : vector<8x128xf32>
    %38 = tpu.matmul %36, %37, %cst_17 {dimension_numbers = #tpu.dot_dimension_numbers<[1], [0], [0], [1], [0, 0, 1, 1], [], []>} : vector<8x128xbf16>, vector<128x128xbf16>, vector<8x128xf32> -> vector<8x128xf32>
    %c0_18 = arith.constant 0 : index
    %c0_19 = arith.constant 0 : index
    %39 = vector.load %arg6[%c0_18, %c0_19] : memref<1x128xf32, #tpu.memory_space<vmem>>, vector<1x128xf32>
    %40 = vector.broadcast %39 : vector<1x128xf32> to vector<8x128xf32>
    %41 = arith.addf %38, %40 : vector<8x128xf32>
    %c0_20 = arith.constant 0 : index
    %c0_21 = arith.constant 0 : index
    %42 = vector.load %arg7[%c0_20, %c0_21] : memref<8x128xf32, #tpu.memory_space<vmem>>, vector<8x128xf32>
    tpu.vector_store %arg7[%c0_20, %c0_21], %41 {strides = array<i32>} : memref<8x128xf32, #tpu.memory_space<vmem>>, vector<8x128xf32>,
    return
  }
  func.func @transform_0(%arg0: i32) -> (i32, i32) {
    %c0_i32 = arith.constant 0 : i32
    %c0_i32_0 = arith.constant 0 : i32
    return %arg0, %c0_i32 : i32, i32
  }
  func.func @transform_1(%arg0: i32) -> (i32, i32) {
    %c0_i32 = arith.constant 0 : i32
    %c0_i32_0 = arith.constant 0 : i32
    %c0_i32_1 = arith.constant 0 : i32
    return %c0_i32, %c0_i32_0 : i32, i32
  }
  func.func @transform_2(%arg0: i32) -> (i32, i32) {
    %c0_i32 = arith.constant 0 : i32
    %c0_i32_0 = arith.constant 0 : i32
    %c0_i32_1 = arith.constant 0 : i32
    return %c0_i32, %c0_i32_0 : i32, i32
  }
  func.func @transform_3(%arg0: i32) -> (i32, i32) {
    %c0_i32 = arith.constant 0 : i32
    %c0_i32_0 = arith.constant 0 : i32
    %c0_i32_1 = arith.constant 0 : i32
    return %c0_i32, %c0_i32_0 : i32, i32
  }
  func.func @transform_4(%arg0: i32) -> (i32, i32) {
    %c0_i32 = arith.constant 0 : i32
    %c0_i32_0 = arith.constant 0 : i32
    %c0_i32_1 = arith.constant 0 : i32
    return %c0_i32, %c0_i32_0 : i32, i32
  }
  func.func @transform_5(%arg0: i32) -> (i32, i32) {
    %c0_i32 = arith.constant 0 : i32
    %c0_i32_0 = arith.constant 0 : i32
    %c0_i32_1 = arith.constant 0 : i32
    return %c0_i32, %c0_i32_0 : i32, i32
  }
  func.func @transform_6(%arg0: i32) -> (i32, i32) {
    %c0_i32 = arith.constant 0 : i32
    %c0_i32_0 = arith.constant 0 : i32
    return %arg0, %c0_i32 : i32, i32
  }
}

</mosaic_0001>

<bundles_post_ra>
// kernel: tpu_custom_call.1
= control target key start
LH: loop header
LB: loop body
LE: loop exit
PB: predicated region body
PF: predicated region fallthrough
CT: control target
= control target key end

     0   :  { %11 = vsyncpa [#allocation3], 0  ;;  %s1280_s0 = inlined_call_operand.hbm [shape: bf16[8,128], index: 0, kind: input, shape index: {}]   ;;  %s1281_s1 = inlined_call_operand.hbm [shape: bf16[128,384], index: 1, kind: input, shape index: {}]   ;;  %s1282_s2 = inlined_call_operand.hbm [shape: bf16[128,384], index: 2, kind: input, shape index: {}]   ;;  %s1283_s3 = inlined_call_operand.hbm [shape: f32[4,384], index: 3, kind: input, shape index: {}]   ;;  %s1284_s4 = inlined_call_operand.hbm [shape: bf16[128,128], index: 4, kind: input, shape index: {}]   ;;  %s1285_s5 = inlined_call_operand.vmem [shape: f32[1,128], index: 5, kind: input, shape index: {}]   ;;  %s1286_s6 = inlined_call_operand.hbm [shape: f32[8,128], index: 6, kind: output, shape index: {}]  }
   0x1   :  { %12 = vsyncpa [#allocation6], 0 }
   0x2   :  { %13 = vsyncpa [#allocation9], 0 }
   0x3   :  { %14 = vsyncpa [#allocation4], 0  ;;  %s1155_s21 = smov [#allocation5]  }
   0x4   :  { %s30_s22 = sshll.u32 %s1155_s21, 4  ;;  %s31_s22 = int_to_ptr.vmem [resolvable:$true] %s30_s22 }
   0x5   :  { %s1035_s23 = scalar_lea.vmem %s31_s22, 3072  ;;  %p1040_p1 = scmp.lt.s32.totalorder %s31_s22, %s31_s22 }
   0x6   :  { %p1036_p0 = scmp.ne.s32.totalorder %s31_s22, %s1035_s23  ;;  %p1041_p2 = scmp.lt.s32.totalorder %s1035_s23, %s1035_s23 }
   0x8   :  { %p1042_p3 = por %p1041_p2, %p1040_p1 }
   0xa   :  { %p1043_p4 = pnand %p1042_p3, %p1036_p0 }
   0xc   :  { %1046 = shalt.err (!%p1043_p4)
}
   0xd   :  { %s1156_s24 = smov 192   ;;  %s1157_s25 = smov 12  }
   0xe   :  { %36 = dma.hbm_to_vmem [thread:$0]  %s1281_s1, 3072, %s31_s22, [#allocation6], %s1156_s24, %s1156_s24, %s1157_s25  }
   0xf   :  { %s1158_s28 = smov [#allocation8]   ;;  %s1159_s30 = smov [#allocation2]  }
  0x10   :  { %s55_s29 = sshll.u32 %s1158_s28, 4  ;;  %s21_s7 = sshll.u32 %s1159_s30, 4  ;;  %s56_s29 = int_to_ptr.vmem [resolvable:$true] %s55_s29  ;;  %s22_s7 = int_to_ptr.vmem [resolvable:$true] %s21_s7 }
  0x11   :  { %s1055_s8 = scalar_lea.vmem %s56_s29, 192  ;;  %p1060_p6 = scmp.lt.s32.totalorder %s56_s29, %s56_s29 }
  0x12   :  { %p1056_p5 = scmp.ne.s32.totalorder %s56_s29, %s1055_s8  ;;  %p1061_p7 = scmp.lt.s32.totalorder %s1055_s8, %s1055_s8 }
  0x14   :  { %p1062_p8 = por %p1061_p7, %p1060_p6 }
  0x16   :  { %p1063_p9 = pnand %p1062_p8, %p1056_p5 }
  0x18   :  { %1066 = shalt.err (!%p1063_p9)
}
  0x19   :  { %58 = dma.hbm_to_vmem [thread:$0]  %s1283_s3, 192, %s56_s29, [#allocation9]  }
  0x1a   :  { %s1075_s11 = scalar_lea.vmem %s22_s7, 64  ;;  %p1080_p11 = scmp.lt.s32.totalorder %s22_s7, %s22_s7 }
  0x1b   :  { %p1076_p10 = scmp.ne.s32.totalorder %s22_s7, %s1075_s11  ;;  %p1081_p12 = scmp.lt.s32.totalorder %s1075_s11, %s1075_s11 }
  0x1d   :  { %p1082_p13 = por %p1081_p12, %p1080_p11 }
  0x1f   :  { %p1083_p0 = pnand %p1082_p13, %p1076_p10 }
  0x21   :  { %1086 = shalt.err (!%p1083_p0)
}
  0x22   :  { %24 = dma.hbm_to_vmem [thread:$0]  %s1280_s0, 64, %s22_s7, [#allocation3]  }
  0x23   :  { %s1160_s13 = smov [#allocation7]   ;;  %s1161_s15 = smov [#allocation10]  }
  0x24   :  { %s42_s14 = sshll.u32 %s1160_s13, 4  ;;  %s64_s16 = sshll.u32 %s1161_s15, 4  ;;  %s43_s14 = int_to_ptr.vmem [resolvable:$true] %s42_s14  ;;  %s65_s16 = int_to_ptr.vmem [resolvable:$true] %s64_s16 }
  0x25   :  { %s1095_s17 = scalar_lea.vmem %s43_s14, 3072  ;;  %p1100_p2 = scmp.lt.s32.totalorder %s43_s14, %s43_s14 }
  0x26   :  { %p1096_p1 = scmp.ne.s32.totalorder %s43_s14, %s1095_s17  ;;  %p1101_p3 = scmp.lt.s32.totalorder %s1095_s17, %s1095_s17 }
  0x28   :  { %p1102_p4 = por %p1101_p3, %p1100_p2 }
  0x2a   :  { %p1103_p5 = pnand %p1102_p4, %p1096_p1 }
  0x2c   :  { %1106 = shalt.err (!%p1103_p5)
}
  0x2d   :  { %48 = dma.hbm_to_vmem [thread:$0]  %s1282_s2, 3072, %s43_s14, [#allocation6], %s1156_s24, %s1156_s24, %s1157_s25  }
  0x2e   :  { %s1115_s0 = scalar_lea.vmem %s65_s16, 1024  ;;  %p1120_p7 = scmp.lt.s32.totalorder %s65_s16, %s65_s16 }
  0x2f   :  { %p1116_p6 = scmp.ne.s32.totalorder %s65_s16, %s1115_s0  ;;  %p1121_p8 = scmp.lt.s32.totalorder %s1115_s0, %s1115_s0 }
  0x31   :  { %p1122_p9 = por %p1121_p8, %p1120_p7 }
  0x33   :  { %p1123_p10 = pnand %p1122_p9, %p1116_p6 }
  0x35   :  { %1126 = shalt.err (!%p1123_p10)
}
  0x36   :  { %s1162_s19 = smov 64   ;;  %s1163_s20 = smov 4  }
  0x37   :  { %70 = dma.hbm_to_vmem [thread:$0]  %s1284_s4, 1024, %s65_s16, [#allocation9], %s1162_s19, %s1162_s19, %s1163_s20  }
  0x38   :  { %1147 = dma.done.wait [#allocation3], 64  }
  0x39   :  { %1148 = vsyncadd [#allocation3], 4294967232 }
  0x3a   :  { %1149 = dma.done.wait [#allocation6], 6144  }
  0x3b   :  { %1150 = vsyncadd [#allocation6], 4294961152 }
  0x3c   :  { %1151 = dma.done.wait [#allocation9], 1216  }
  0x3d   :  { %1152 = vsyncadd [#allocation9], 4294966080  ;;  %v1164_v0 = vmov 0.0   ;;  %vm1165_vm0 = vmmov 0   ;;  %v1166_v1 = vmov 0   ;;  %v335_v51 = vlaneseq  ;;  %s1167_s23 = smov [#allocation11]  }
  0x3e   :  { %882 = vmatprep.subr.bf16.mxu1 %v1164_v0  ;;  %898 = vmatprep.mubr.msk.bf16.mxu1 %vm1165_vm0, %v1164_v0  ;;  %v955_v2 = vld [vmem:[#allocation5 + $0xac] ss:$12 sps:$4 sm:$0xff]   ;;  %v957_v3 = vld [vmem:[#allocation5 + $0xb0] ss:$12 sps:$4 sm:$0xff]   ;;  %v958_v4 = vld [vmem:[#allocation5 + $0xa8] ss:$12 sps:$4 sm:$0xff]  }
  0x3f   :  { %282 = vmatprep.mubr.bf16.mxu0 %v1166_v1  ;;  %250 = vmatprep.subr.bf16.mxu0 %v955_v2  ;;  %v959_v5 = vld [vmem:[#allocation5 + $0x94] ss:$12 sps:$4 sm:$0xff]   ;;  %v961_v6 = vld [vmem:[#allocation5 + $0x98] ss:$12 sps:$4 sm:$0xff]   ;;  %v962_v7 = vld [vmem:[#allocation5 + $0x90] ss:$12 sps:$4 sm:$0xff]  }
  0x40   :  { %883 = vmatpush3.bf16.msra.mxu1 %v957_v3  ;;  %251 = vmatpush1.bf16.msra.mxu0 %v958_v4  ;;  %v963_v8 = vld [vmem:[#allocation5 + $0x7c] ss:$12 sps:$4 sm:$0xff]   ;;  %v965_v9 = vld [vmem:[#allocation5 + $0x80] ss:$12 sps:$4 sm:$0xff]   ;;  %v966_v10 = vld [vmem:[#allocation5 + $0x78] ss:$12 sps:$4 sm:$0xff]  }
  0x41   :  { %884 = vmatprep.subr.bf16.mxu1 %v1164_v0  ;;  %252 = vmatprep.subr.bf16.mxu0 %v959_v5  ;;  %v967_v11 = vld [vmem:[#allocation5 + $0x64] ss:$12 sps:$4 sm:$0xff]   ;;  %v969_v12 = vld [vmem:[#allocation5 + $0x68] ss:$12 sps:$4 sm:$0xff]   ;;  %v970_v13 = vld [vmem:[#allocation5 + $0x60] ss:$12 sps:$4 sm:$0xff]  }
  0x42   :  { %v971_v14 = vld [vmem:[#allocation5 + $0x4c] ss:$12 sps:$4 sm:$0xff]   ;;  %v973_v15 = vld [vmem:[#allocation5 + $0x50] ss:$12 sps:$4 sm:$0xff]   ;;  %v974_v16 = vld [vmem:[#allocation5 + $0x48] ss:$12 sps:$4 sm:$0xff]  }
  0x43   :  { %v975_v17 = vld [vmem:[#allocation5 + $0x34] ss:$12 sps:$4 sm:$0xff]   ;;  %v977_v18 = vld [vmem:[#allocation5 + $0x38] ss:$12 sps:$4 sm:$0xff]   ;;  %v978_v19 = vld [vmem:[#allocation5 + $0x30] ss:$12 sps:$4 sm:$0xff]  }
  0x44   :  { %885 = vmatpush3.bf16.msra.mxu1 %v961_v6  ;;  %253 = vmatpush1.bf16.msra.mxu0 %v962_v7  ;;  %v979_v20 = vld [vmem:[#allocation5 + $0x1c] ss:$12 sps:$4 sm:$0xff]   ;;  %v981_v21 = vld [vmem:[#allocation5 + $0x20] ss:$12 sps:$4 sm:$0xff]   ;;  %v982_v22 = vld [vmem:[#allocation5 + $0x18] ss:$12 sps:$4 sm:$0xff]  }
  0x45   :  { %886 = vmatprep.subr.bf16.mxu1 %v1164_v0  ;;  %254 = vmatprep.subr.bf16.mxu0 %v963_v8  ;;  %v983_v23 = vld [vmem:[#allocation5 + $0x4] ss:$12 sps:$4 sm:$0xff]   ;;  %v985_v24 = vld [vmem:[#allocation5 + $0x8] ss:$12 sps:$4 sm:$0xff]   ;;  %v986_v25 = vld [vmem:[#allocation5] ss:$12 sps:$4 sm:$0xff]  }
  0x46   :  { %v989_v26 = vld [vmem:[#allocation7 + $0xac] ss:$12 sps:$4 sm:$0xff]   ;;  %v89_v27 = vld [vmem:[#allocation2] sm:$0xf]  ;;  %v987_v29 = vld [vmem:[#allocation7 + $0xa8] ss:$12 sps:$4 sm:$0xff]  }
  0x47   :  { %v990_v28 = vld [vmem:[#allocation7 + $0xb0] ss:$12 sps:$4 sm:$0xff]   ;;  %v993_v30 = vld [vmem:[#allocation7 + $0x94] ss:$12 sps:$4 sm:$0xff]   ;;  %v994_v31 = vld [vmem:[#allocation7 + $0x98] ss:$12 sps:$4 sm:$0xff]  }
  0x48   :  { %887 = vmatpush3.bf16.msra.mxu1 %v965_v9  ;;  %255 = vmatpush1.bf16.msra.mxu0 %v966_v10  ;;  %v991_v32 = vld [vmem:[#allocation7 + $0x90] ss:$12 sps:$4 sm:$0xff]   ;;  %v998_v34 = vld [vmem:[#allocation7 + $0x80] ss:$12 sps:$4 sm:$0xff]   ;;  %v995_v35 = vld [vmem:[#allocation7 + $0x78] ss:$12 sps:$4 sm:$0xff]  }
  0x49   :  { %888 = vmatprep.subr.bf16.mxu1 %v1164_v0  ;;  %256 = vmatprep.subr.bf16.mxu0 %v967_v11  ;;  %v997_v33 = vld [vmem:[#allocation7 + $0x7c] ss:$12 sps:$4 sm:$0xff]   ;;  %v1001_v36 = vld [vmem:[#allocation7 + $0x64] ss:$12 sps:$4 sm:$0xff]   ;;  %v999_v38 = vld [vmem:[#allocation7 + $0x60] ss:$12 sps:$4 sm:$0xff]  }
  0x4a   :  { %v1002_v37 = vld [vmem:[#allocation7 + $0x68] ss:$12 sps:$4 sm:$0xff]   ;;  %v1005_v39 = vld [vmem:[#allocation7 + $0x4c] ss:$12 sps:$4 sm:$0xff]   ;;  %v1006_v41 = vld [vmem:[#allocation7 + $0x50] ss:$12 sps:$4 sm:$0xff]  }
  0x4b   :  { %v1003_v40 = vld [vmem:[#allocation7 + $0x48] ss:$12 sps:$4 sm:$0xff]   ;;  %v1007_v43 = vld [vmem:[#allocation7 + $0x30] ss:$12 sps:$4 sm:$0xff]   ;;  %v1010_v44 = vld [vmem:[#allocation7 + $0x38] ss:$12 sps:$4 sm:$0xff]  }
  0x4c   :  { %889 = vmatpush3.bf16.msra.mxu1 %v969_v12  ;;  %257 = vmatpush1.bf16.msra.mxu0 %v970_v13  ;;  %v1009_v42 = vld [vmem:[#allocation7 + $0x34] ss:$12 sps:$4 sm:$0xff]   ;;  %v1013_v45 = vld [vmem:[#allocation7 + $0x1c] ss:$12 sps:$4 sm:$0xff]   ;;  %v1011_v46 = vld [vmem:[#allocation7 + $0x18] ss:$12 sps:$4 sm:$0xff]  }
  0x4d   :  { %890 = vmatprep.subr.bf16.mxu1 %v1164_v0  ;;  %258 = vmatprep.subr.bf16.mxu0 %v971_v14  ;;  %v1014_v47 = vld [vmem:[#allocation7 + $0x20] ss:$12 sps:$4 sm:$0xff]   ;;  %v1017_v48 = vld [vmem:[#allocation7 + $0x4] ss:$12 sps:$4 sm:$0xff]   ;;  %v1018_v50 = vld [vmem:[#allocation7 + $0x8] ss:$12 sps:$4 sm:$0xff]  }
  0x4e   :  { %v1015_v49 = vld [vmem:[#allocation7] ss:$12 sps:$4 sm:$0xff]   ;;  %v336_v52 = vshrl.u32 %v335_v51, 7  ;;  %s787_s24 = sshll.u32 %s1167_s23, 4  ;;  %s788_s24 = int_to_ptr.vmem [resolvable:$true] %s787_s24 }
  0x4f   :  { %v331_v55 = vld [vmem:[#allocation8] ss:$4 sm:$0x7]  ;;  %v333_v57 = vld [vmem:[#allocation8 + $0x1] ss:$4 sm:$0x7]  ;;  %p1132_p12 = scmp.lt.s32.totalorder %s788_s24, %s788_s24 }
  0x50   :  { %891 = vmatpush3.bf16.msra.mxu1 %v973_v15  ;;  %259 = vmatpush1.bf16.msra.mxu0 %v974_v16  ;;  %v1247_v53 = vsub.s32 2, %v336_v52  ;;  %v1249_v54 = vsub.s32 0, %v336_v52  ;;  %v1251_v56 = vsub.s32 1, %v336_v52  ;;  %s1127_s25 = scalar_lea.vmem %s788_s24, 128 }
  0x51   :  { %892 = vmatprep.subr.bf16.mxu1 %v1164_v0  ;;  %260 = vmatprep.subr.bf16.mxu0 %v975_v17  ;;  %p1128_p11 = scmp.ne.s32.totalorder %s788_s24, %s1127_s25  ;;  %p1133_p13 = scmp.lt.s32.totalorder %s1127_s25, %s1127_s25 }
  0x52   :  { %v346_v58 = vrot.slane %v331_v55, %v1247_v53  ;;  %v338_v59 = vrot.slane %v331_v55, %v1249_v54  ;;  %v365_v61 = vrot.slane %v333_v57, %v1247_v53  ;;  %v357_v62 = vrot.slane %v333_v57, %v1249_v54 }
  0x53   :  { %v342_v63 = vrot.slane %v331_v55, %v1251_v56  ;;  %v361_v5 = vrot.slane %v333_v57, %v1251_v56  ;;  %p1134_p0 = por %p1133_p13, %p1132_p12 }
  0x54   :  { %893 = vmatpush3.bf16.msra.mxu1 %v977_v18  ;;  %261 = vmatpush1.bf16.msra.mxu0 %v978_v19 }
  0x55   :  { %894 = vmatprep.subr.bf16.mxu1 %v1164_v0  ;;  %262 = vmatprep.subr.bf16.mxu0 %v979_v20  ;;  %p1135_p1 = pnand %p1134_p0, %p1128_p11 }
  0x58   :  { %895 = vmatpush3.bf16.msra.mxu1 %v981_v21  ;;  %263 = vmatpush1.bf16.msra.mxu0 %v982_v22  ;;  %v1019_v21 = vld [vmem:[#allocation10 + $0x38] sm:$0xff]  }
  0x59   :  { %896 = vmatprep.subr.bf16.mxu1 %v1164_v0  ;;  %264 = vmatprep.subr.bf16.mxu0 %v983_v23  ;;  %v1020_v23 = vld [vmem:[#allocation10 + $0x30] sm:$0xff]  }
  0x5c   :  { %897 = vmatpush3.bf16.msra.mxu1 %v985_v24  ;;  %265 = vmatpush1.bf16.msra.mxu0 %v986_v25  ;;  %v1021_v24 = vld [vmem:[#allocation10 + $0x28] sm:$0xff]   ;;  %v1022_v25 = vld [vmem:[#allocation10 + $0x20] sm:$0xff]  }
  0x5d   :  { %902 = vmatprep.subr.bf16.mxu1 %v1164_v0  ;;  %539 = vmatprep.subr.bf16.mxu0 %v989_v26  ;;  %v1023_v26 = vld [vmem:[#allocation10 + $0x18] sm:$0xff]  }
  0x5f   :  { %899 = vmatmul.mubr.bf16.vlgmr.msra.gmra.mxu1 %v89_v27  ;;  %283 = vmatmul.mubr.bf16.vlgmr.msra.gmra.mxu0 %v89_v27  ;;  %v1024_v27 = vld [vmem:[#allocation10 + $0x10] sm:$0xff]  }
  0x60   :  { %903 = vmatpush3.bf16.msra.mxu1 %v990_v28  ;;  %540 = vmatpush1.bf16.msra.mxu0 %v987_v29  ;;  %v1025_v28 = vld [vmem:[#allocation10 + $0x8] sm:$0xff]   ;;  %v1026_v29 = vld [vmem:[#allocation10] sm:$0xff]  }
  0x61   :  { %904 = vmatprep.subr.bf16.mxu1 %v1164_v0  ;;  %541 = vmatprep.subr.bf16.mxu0 %v993_v30  ;;  %v621_v30 = vld [vmem:[#allocation8 + $0x2] ss:$4 sm:$0x7] }
  0x62   :  { %571 = vmatprep.mubr.bf16.mxu0 %v1166_v1  ;;  %918 = vmatprep.mubr.msk.bf16.mxu1 %vm1165_vm0, %v1164_v0 }
  0x64   :  { %905 = vmatpush3.bf16.msra.mxu1 %v994_v31  ;;  %542 = vmatpush1.bf16.msra.mxu0 %v991_v32  ;;  %v623_v31 = vld [vmem:[#allocation8 + $0x3] ss:$4 sm:$0x7]  ;;  %v628_v32 = vrot.slane %v621_v30, %v1249_v54 }
  0x65   :  { %906 = vmatprep.subr.bf16.mxu1 %v1164_v0  ;;  %543 = vmatprep.subr.bf16.mxu0 %v997_v33  ;;  %v636_v33 = vrot.slane %v621_v30, %v1247_v53 }
  0x68   :  { %907 = vmatpush3.bf16.msra.mxu1 %v998_v34  ;;  %544 = vmatpush1.bf16.msra.mxu0 %v995_v35  ;;  %v647_v34 = vrot.slane %v623_v31, %v1249_v54  ;;  %v632_v35 = vrot.slane %v621_v30, %v1251_v56 }
  0x69   :  { %908 = vmatprep.subr.bf16.mxu1 %v1164_v0  ;;  %545 = vmatprep.subr.bf16.mxu0 %v1001_v36 }
  0x6c   :  { %909 = vmatpush3.bf16.msra.mxu1 %v1002_v37  ;;  %546 = vmatpush1.bf16.msra.mxu0 %v999_v38 }
  0x6d   :  { %910 = vmatprep.subr.bf16.mxu1 %v1164_v0  ;;  %547 = vmatprep.subr.bf16.mxu0 %v1005_v39 }
  0x70   :  { %548 = vmatpush1.bf16.msra.mxu0 %v1003_v40  ;;  %911 = vmatpush3.bf16.msra.mxu1 %v1006_v41  ;;  %v655_v40 = vrot.slane %v623_v31, %v1247_v53  ;;  %v846_v53 = vld [vmem:[%s1285_s5] ss:$0 sm:$0xff] }
  0x71   :  { %912 = vmatprep.subr.bf16.mxu1 %v1164_v0  ;;  %549 = vmatprep.subr.bf16.mxu0 %v1009_v42 }
  0x74   :  { %550 = vmatpush1.bf16.msra.mxu0 %v1007_v43  ;;  %913 = vmatpush3.bf16.msra.mxu1 %v1010_v44 }
  0x75   :  { %914 = vmatprep.subr.bf16.mxu1 %v1164_v0  ;;  %551 = vmatprep.subr.bf16.mxu0 %v1013_v45 }
  0x78   :  { %552 = vmatpush1.bf16.msra.mxu0 %v1011_v46  ;;  %915 = vmatpush3.bf16.msra.mxu1 %v1014_v47 }
  0x79   :  { %916 = vmatprep.subr.bf16.mxu1 %v1164_v0  ;;  %553 = vmatprep.subr.bf16.mxu0 %v1017_v48 }
  0x7c   :  { %554 = vmatpush1.bf16.msra.mxu0 %v1015_v49  ;;  %917 = vmatpush3.bf16.msra.mxu1 %v1018_v50 }
  0x7d   :  { %922 = vmatprep.subr.bf16.mxu0 %v1164_v0 }
 0x11f   :  { %v325_v60 = vpop.f32.mrf.mxu1  ;;  %v284_v2 = vpop.f32.mrf.mxu0 }
 0x120   :  { %v352_v1 = vmul.f32 %v346_v58, %v325_v60  ;;  %v350_v3 = vmul.f32 %v338_v59, %v284_v2 }
 0x121   :  { %v900_v4 = vpop.f32.mrf.mxu1  ;;  %v286_v6 = vpop.f32.mrf.mxu0 }
 0x122   :  { %v371_v7 = vadd.f32 %v365_v61, %v352_v1  ;;  %v369_v8 = vadd.f32 %v357_v62, %v350_v3  ;;  %v351_v9 = vmul.f32 %v342_v63, %v286_v6 }
 0x123   :  { %v328_v10 = vpop.f32.mrf.mxu1  ;;  %v288_v11 = vpop.f32.mrf.mxu0 }
 0x124   :  { %v370_v12 = vadd.f32 %v361_v5, %v351_v9  ;;  %v374_v15 = vmax.f32 %v371_v7, 0.0  ;;  %v372_v16 = vmax.f32 %v369_v8, 0.0 }
 0x125   :  { %v901_v13 = vpop.f32.mrf.mxu1  ;;  %v289_v14 = vpop.f32.mrf.mxu0 }
 0x126   :  { %v373_v17 = vmax.f32 %v370_v12, 0.0 }
 0x128   :  { %v375_v18 = vadd.f32 %v373_v17, %v372_v16 }
 0x12a   :  { %v376_v19 = vadd.f32 %v375_v18, %v374_v15 }
 0x12c   :  { %v377_v20 = vmul.f32 0.33333334, %v376_v19 }
 0x12e   :  { %v378_v22 = vpack.c.bf16 %v377_v20, %v377_v20 }
 0x130   :  { %572 = vmatmul.mubr.bf16.vlgmr.msra.gmra.mxu0 %v378_v22  ;;  %919 = vmatmul.mubr.bf16.vlgmr.msra.gmra.mxu1 %v378_v22 }
 0x131   :  { %923 = vmatpush3.bf16.msra.mxu0 %v1019_v21  ;;  %938 = vmatprep.mubr.msk.bf16.mxu0 %vm1165_vm0, %v1164_v0 }
 0x132   :  { %924 = vmatprep.subr.bf16.mxu0 %v1164_v0 }
 0x135   :  { %925 = vmatpush3.bf16.msra.mxu0 %v1020_v23 }
 0x136   :  { %926 = vmatprep.subr.bf16.mxu0 %v1164_v0 }
 0x139   :  { %927 = vmatpush3.bf16.msra.mxu0 %v1021_v24 }
 0x13a   :  { %928 = vmatprep.subr.bf16.mxu0 %v1164_v0 }
 0x13d   :  { %929 = vmatpush3.bf16.msra.mxu0 %v1022_v25 }
 0x13e   :  { %930 = vmatprep.subr.bf16.mxu0 %v1164_v0 }
 0x141   :  { %931 = vmatpush3.bf16.msra.mxu0 %v1023_v26 }
 0x142   :  { %932 = vmatprep.subr.bf16.mxu0 %v1164_v0 }
 0x145   :  { %933 = vmatpush3.bf16.msra.mxu0 %v1024_v27 }
 0x146   :  { %934 = vmatprep.subr.bf16.mxu0 %v1164_v0 }
 0x149   :  { %935 = vmatpush3.bf16.msra.mxu0 %v1025_v28 }
 0x14a   :  { %936 = vmatprep.subr.bf16.mxu0 %v1164_v0  ;;  %v651_v0 = vrot.slane %v623_v31, %v1251_v56 }
 0x14d   :  { %937 = vmatpush3.bf16.msra.mxu0 %v1026_v29 }
 0x1f0   :  { %v573_v36 = vpop.f32.mrf.mxu0  ;;  %v614_v37 = vpop.f32.mrf.mxu1 }
 0x1f1   :  { %v640_v38 = vmul.f32 %v628_v32, %v573_v36  ;;  %v642_v39 = vmul.f32 %v636_v33, %v614_v37 }
 0x1f2   :  { %v575_v41 = vpop.f32.mrf.mxu0  ;;  %v920_v42 = vpop.f32.mrf.mxu1 }
 0x1f3   :  { %v659_v43 = vadd.f32 %v647_v34, %v640_v38  ;;  %v641_v44 = vmul.f32 %v632_v35, %v575_v41  ;;  %v661_v47 = vadd.f32 %v655_v40, %v642_v39 }
 0x1f4   :  { %v577_v45 = vpop.f32.mrf.mxu0  ;;  %v617_v46 = vpop.f32.mrf.mxu1 }
 0x1f5   :  { %v660_v48 = vadd.f32 %v651_v0, %v641_v44  ;;  %v662_v51 = vmax.f32 %v659_v43, 0.0  ;;  %v664_v54 = vmax.f32 %v661_v47, 0.0 }
 0x1f6   :  { %v578_v49 = vpop.f32.mrf.mxu0  ;;  %v921_v50 = vpop.f32.mrf.mxu1 }
 0x1f7   :  { %v663_v52 = vmax.f32 %v660_v48, 0.0 }
 0x1f9   :  { %v665_v55 = vadd.f32 %v663_v52, %v662_v51 }
 0x1fb   :  { %v666_v57 = vadd.f32 %v665_v55, %v664_v54 }
 0x1fd   :  { %v667_v58 = vmul.f32 0.33333334, %v666_v57 }
 0x1ff   :  { %v668_v59 = vpack.c.bf16 %v667_v58, %v667_v58 }
 0x201   :  { %939 = vmatmul.mubr.bf16.vlgmr.msra.gmra.mxu0 %v668_v59 }
 0x2c1   :  { %v774_v56 = vpop.f32.mrf.mxu0 }
 0x2c2   :  { %v775_v60 = vadd.f32 %v846_v53, %v774_v56 }
 0x2c3   :  { %v940_v61 = vpop.f32.mrf.mxu0 }
 0x2c4   :  { %780 = vst [vmem:[#allocation11] sm:$0xff] %v775_v60 }
 0x2c5   :  { %v777_v62 = vpop.f32.mrf.mxu0 }
 0x2c6   :  { %1138 = shalt.err (!%p1135_p1)
}
 0x2c7   :  { %790 = dma.vmem_to_hbm [thread:$0]  %s788_s24, 128, %s1286_s6, [#allocation4]   ;;  %v941_v63 = vpop.f32.mrf.mxu0 }
 0x2c8   :  { %1153 = dma.done.wait [#allocation4], 128  }
 0x2c9   :  { %1154 = vsyncadd [#allocation4], 4294967168 }
 0x2ca   :  { %794 = vsyncpa [#allocation3], 1 }
 0x2cb   :  { %795 = vsyncpa [#allocation6], 1 }
 0x2cc   :  { %796 = vsyncpa [#allocation9], 1 }
 0x2cd   :  { %797 = vsyncpa [#allocation4], 1 }

</bundles_post_ra>
